<compile_context>
chip_gen: v5e
topology: v5e:2x2
jax: 0.10.0
libtpu: 0.0.40
codegen_flags: <defaults>
</compile_context>

<pallas_src>
import math

import jax
import jax.numpy as jnp
from jax.experimental import pallas as pl
from jax.experimental.pallas import tpu as pltpu


# ------------------------------ helpers -------------------------------------


def _round_up(x, mult):
    return ((x + mult - 1) // mult) * mult


def _pick_tile_and_vmem(m, n, num_input_streams):
    """Largest row tile whose double-buffered f32 input blocks fit comfortably
    in scoped VMEM (generation-aware), plus a raised scoped-VMEM limit.

    num_input_streams: 1 (argmax path) or 2 (logits + gumbel noise)."""
    try:  # trace-time hardware query; fall back when not running on a TPU host
        vmem_cap = int(pltpu.get_tpu_info().vmem_capacity_bytes)
    except Exception:
        vmem_cap = 64 * 1024 * 1024  # conservative: v7x per-core physical VMEM

    budget = vmem_cap // 3                          # headroom: outputs, compiler temps
    bytes_per_row = num_input_streams * 2 * n * 4   # double-buffered f32 streams
    tm = max(8, budget // max(bytes_per_row, 1))
    tm = min(tm, 1024)                              # diminishing returns past ~512-1024 rows
    tm = (tm // 128) * 128 if tm >= 128 else (tm // 8) * 8
    tm = min(max(tm, 8), _round_up(m, 8))           # never tile wider than the problem
    # TODO(synk): if N is so wide that even an 8-row block overflows VMEM, add a
    #             second ("arbitrary") grid axis over N carrying running
    #             (max, argmax) in scratch instead of shrinking tm further.
    vmem_limit = int(min(vmem_cap * 3 // 4, 112 * 1024 * 1024))
    return tm, vmem_limit


# ------------------------------ kernels --------------------------------------


def _first_argmax_lane_row(x):
    """Index of the first maximum along the last axis of x (tm, n), returned as
    a lane-dense (1, tm) float32 row (matches torch.max first-occurrence
    tie-break).  Note: indices are exact in float32 only for n < 2**24."""
    n = x.shape[-1]
    row_max = jnp.max(x, axis=-1, keepdims=True)                    # (tm, 1)   XLU
    lane_idx = jax.lax.broadcasted_iota(jnp.int32, x.shape, 1)       # (tm, n)
    sel = jnp.where(x == row_max, lane_idx, jnp.int32(n))            # (tm, n)   VPU
    col = jnp.min(sel, axis=-1, keepdims=True).astype(jnp.float32)   # (tm, 1)   XLU
    return jnp.transpose(col)                                        # (1, tm) lane-dense


def _argmax_kernel(x_ref, out_ref):
    """Eval path: symbols = argmax(logits, axis=-1), emitted as float32."""
    out_ref[...] = _first_argmax_lane_row(x_ref[...].astype(jnp.float32))


def _sample_kernel(x_ref, g_ref, out_ref):
    """Train path: symbols ~ Categorical(logits) via Gumbel-max (noise fused in)."""
    x = x_ref[...].astype(jnp.float32) + g_ref[...]
    out_ref[...] = _first_argmax_lane_row(x)


# ------------------------------ wrapper --------------------------------------


def symbolizer_forward(logits, sample_path=False, training=False, seed=0):
    """Pallas implementation of SymbolizerFunction.forward (symbols only).

    Returns float32 symbols with shape logits.shape[:-1]."""
    orig_shape = logits.shape
    n = int(orig_shape[-1])
    m = int(math.prod(orig_shape[:-1])) if len(orig_shape) > 1 else 1
    x = logits.reshape(m, n)
    # TODO(synk): when n << 128 the lane axis is under-utilized; packing 128/n
    #             rows per lane row with a segmented reduction would recover
    #             bandwidth for tiny-vocabulary workloads.

    do_sample = bool(sample_path and training)
    num_streams = 2 if do_sample else 1
    tm, vmem_limit = _pick_tile_and_vmem(m, n, num_streams)
    num_blocks = pl.cdiv(m, tm)  # partial last block handled by Pallas edge padding

    compiler_params = pltpu.CompilerParams(
        # Row blocks are fully independent (no in-kernel PRNG state), so both
        # paths are "parallel" -> sharded across the two TensorCores on v7x.
        dimension_semantics=("parallel",),
        vmem_limit_bytes=vmem_limit,
    )
    out_shape = jax.ShapeDtypeStruct((num_blocks, tm), jnp.float32)
    out_spec = pl.BlockSpec((1, tm), lambda i: (i, 0))      # lane-dense output block
    in_spec = pl.BlockSpec((tm, n), lambda i: (i, 0))

    if do_sample:
        # Independent stream per seed via the counter-based JAX PRNG (no
        # overlapping-stream issue between adjacent seeds).
        gumbel = jax.random.gumbel(
            jax.random.PRNGKey(seed), (m, n), dtype=jnp.float32
        )
        out = pl.pallas_call(
            _sample_kernel,
            out_shape=out_shape,
            grid_spec=pltpu.PrefetchScalarGridSpec(
                num_scalar_prefetch=0,
                grid=(num_blocks,),
                in_specs=[in_spec, in_spec],
                out_specs=out_spec,
            ),
            compiler_params=compiler_params,
        )(x, gumbel)
    else:
        out = pl.pallas_call(
            _argmax_kernel,
            out_shape=out_shape,
            grid_spec=pltpu.PrefetchScalarGridSpec(
                num_scalar_prefetch=0,
                grid=(num_blocks,),
                in_specs=[in_spec],
                out_specs=out_spec,
            ),
            compiler_params=compiler_params,
        )(x)

    # (num_blocks, tm) -> flat rows -> drop row padding -> original leading dims.
    return out.reshape(num_blocks * tm)[:m].reshape(orig_shape[:-1])


class Symbolizer:
    """Mirror of the nn.Module: forward only."""

    def __init__(self, sample_path):
        self.sample_path = sample_path
        self.training = True

    def __repr__(self):
        return "{}({})".format(self.__class__.__name__, "RL symbolizer")

    def eval(self):
        self.training = False
        return self

    def train(self):
        self.training = True
        return self

    def __call__(self, logits, seed=0):
        return symbolizer_forward(
            logits, sample_path=self.sample_path, training=self.training, seed=seed
        )


# ------------------------------ demo / check ---------------------------------


if __name__ == "__main__":
    key = jax.random.PRNGKey(0)
    B, S, N = 2, 8, 32  # logits: (batch, seq, num_symbols)
    logits = jax.random.normal(key, (B, S, N), dtype=jnp.float32)

    sym = Symbolizer(sample_path=True)

    # Eval path -> argmax over last dim.
    out_eval = sym.eval()(logits)
    jax.block_until_ready(out_eval)
    ref = jnp.argmax(logits, axis=-1).astype(jnp.float32)
    assert out_eval.shape == (B, S)
    assert out_eval.dtype == jnp.float32
    assert jnp.array_equal(out_eval, ref), "argmax path mismatch vs reference"

    # Training path -> categorical sample (Gumbel-max) over last dim.
    out_train = sym.train()(logits, seed=42)
    jax.block_until_ready(out_train)
    assert out_train.shape == (B, S)
    assert out_train.dtype == jnp.float32
    assert bool(jnp.all((out_train >= 0) & (out_train < N)))
    assert bool(jnp.all(out_train == jnp.round(out_train)))  # integral symbols

    print("KERNEL_OK")
</pallas_src>

<mosaic_0001>
module attributes {stable_mosaic.version = 11 : i64} {
  func.func @_argmax_kernel(%arg0: i32, %arg1: memref<16x32xf32, #tpu.memory_space<vmem>>, %arg2: memref<1x16xf32, #tpu.memory_space<vmem>>) attributes {dimension_semantics = [#tpu.dimension_semantics<parallel>], iteration_bounds = array<i64: 1>, scalar_prefetch = 0 : i64, scratch_operands = 0 : i64, tpu.core_type = #tpu.core_type<tc>, window_params = [{transform_indices = @transform_0, window_bounds = array<i64: 16, 32>}, {transform_indices = @transform_1, window_bounds = array<i64: 1, 16>}]} {
    %c0 = arith.constant 0 : index
    %c0_0 = arith.constant 0 : index
    %0 = vector.load %arg1[%c0, %c0_0] : memref<16x32xf32, #tpu.memory_space<vmem>>, vector<16x32xf32>
    %cst = arith.constant dense<0xFF800000> : vector<16xf32>
    %1 = vector.multi_reduction <maximumf>, %0, %cst [1] : vector<16x32xf32> to vector<16xf32>
    %2 = vector.shape_cast %1 : vector<16xf32> to vector<16x1xf32>
    %3 = tpu.iota {dimensions = array<i32: 1>} : vector<16x32xi32>
    %4 = vector.broadcast %2 : vector<16x1xf32> to vector<16x32xf32>
    %5 = arith.cmpf oeq, %0, %4 : vector<16x32xf32>
    %c32_i32 = arith.constant 32 : i32
    %6 = vector.broadcast %c32_i32 : i32 to vector<16x32xi32>
    %7 = arith.select %5, %3, %6 : vector<16x32xi1>, vector<16x32xi32>
    %cst_1 = arith.constant dense<2147483647> : vector<16xi32>
    %8 = vector.multi_reduction <minsi>, %7, %cst_1 [1] : vector<16x32xi32> to vector<16xi32>
    %9 = vector.shape_cast %8 : vector<16xi32> to vector<16x1xi32>
    %10 = arith.sitofp %9 : vector<16x1xi32> to vector<16x1xf32>
    %11 = tpu.transpose %10, [1, 0] : vector<16x1xf32> -> vector<1x16xf32>
    %c0_2 = arith.constant 0 : index
    %c0_3 = arith.constant 0 : index
    %12 = vector.load %arg2[%c0_2, %c0_3] : memref<1x16xf32, #tpu.memory_space<vmem>>, vector<1x16xf32>
    tpu.vector_store %arg2[%c0_2, %c0_3], %11 {strides = array<i32>} : memref<1x16xf32, #tpu.memory_space<vmem>>, vector<1x16xf32>,
    return
  }
  func.func @transform_0(%arg0: i32) -> (i32, i32) {
    %c0_i32 = arith.constant 0 : i32
    %c0_i32_0 = arith.constant 0 : i32
    return %arg0, %c0_i32 : i32, i32
  }
  func.func @transform_1(%arg0: i32) -> (i32, i32) {
    %c0_i32 = arith.constant 0 : i32
    %c0_i32_0 = arith.constant 0 : i32
    return %arg0, %c0_i32 : i32, i32
  }
}

</mosaic_0001>

<bundles_post_ra>
// kernel: tpu_custom_call.1
= control target key start
LH: loop header
LB: loop body
LE: loop exit
PB: predicated region body
PF: predicated region fallthrough
CT: control target
= control target key end

     0   :  { %6 = vsyncpa [#allocation3], 0  ;;  %s204_s0 = inlined_call_operand.hbm [shape: f32[16,32], index: 0, kind: input, shape index: {}]   ;;  %s205_s1 = inlined_call_operand.hbm [shape: f32[1,16], index: 1, kind: output, shape index: {}]  }
   0x1   :  { %7 = vsyncpa [#allocation4], 0  ;;  %s12_s8 = sshll.u32 %s204_s0, 4  ;;  %s180_s9 = smov [#allocation2]   ;;  %s13_s8 = int_to_ptr.hbm [resolvable:$true] %s12_s8 }
   0x2   :  { %s14_s10 = sshll.u32 %s180_s9, 4  ;;  %s181_s11 = smov 128   ;;  %s15_s10 = int_to_ptr.vmem [resolvable:$true] %s14_s10 }
   0x3   :  { %s182_s12 = smov 8  }
   0x4   :  { %20 = dma.hbm_to_vmem [thread:$0]  %s13_s8, 256, %s15_s10, [#allocation3], %s181_s11, %s181_s11, %s182_s12  }
   0x5   :  { %176 = dma.done.wait [#allocation3], 256  }
   0x6   :  { %177 = vsyncadd [#allocation3], 4294967040  ;;  %vm27_vm0 = vcmask 261120   ;;  %v25_v0 = vld [vmem:[#allocation2] sm:$0xff]  ;;  %v26_v2 = vld [vmem:[#allocation2 + $0x8] sm:$0xff]  ;;  %v34_v4 = vlaneseq  ;;  %s183_s0 = smov [#allocation5]  }
   0x7   :  { %v28_v1 = vsel %vm27_vm0, %v25_v0, -inf  ;;  %v31_v3 = vsel %vm27_vm0, %v26_v2, -inf  ;;  %s111_s13 = sshll.u32 %s183_s0, 4  ;;  %s113_s16 = sshll.u32 %s205_s1, 4  ;;  %vm104_vm5 = vcmask 122880   ;;  %s112_s13 = int_to_ptr.vmem [resolvable:$true] %s111_s13  ;;  %s114_s16 = int_to_ptr.hbm [resolvable:$true] %s113_s16 }
   0x8   :  { %29 = vmax.xlane.f32.xlu0 %v28_v1  ;;  %v35_v5 = vand.u32 127, %v34_v4 }
  0x10   :  { %32 = vmax.xlane.f32.xlu0 %v31_v3 }
  0x7b   :  { %v30_v6 = vpop.xlane.xlu0 %29 }
  0x7c   :  { %vm36_vm1 = vcmp.eq.f32.partialorder %v25_v0, %v30_v6 }
  0x7d   :  { %v38_v7 = vsel %vm36_vm1, %v35_v5, 32 }
  0x7e   :  { %v40_v8 = vsel %vm27_vm0, %v38_v7, 2147483647 }
  0x7f   :  { %v42_v9 = vshra.s32 %v40_v8, 16  ;;  %v41_v16 = vand.u32 65535, %v40_v8 }
  0x81   :  { %v44_v10 = vcvt.s32.f32 %v42_v9  ;;  %v43_v18 = vcvt.s32.f32 %v41_v16 }
  0x83   :  { %45 = vmin.xlane.f32.xlu1 %v44_v10  ;;  %v33_v11 = vpop.xlane.xlu0 %32 }
  0x84   :  { %vm37_vm2 = vcmp.eq.f32.partialorder %v26_v2, %v33_v11 }
  0x85   :  { %v39_v12 = vsel %vm37_vm2, %v35_v5, 32 }
  0x86   :  { %v55_v13 = vsel %vm27_vm0, %v39_v12, 2147483647 }
  0x87   :  { %v57_v14 = vshra.s32 %v55_v13, 16  ;;  %v56_v20 = vand.u32 65535, %v55_v13 }
  0x89   :  { %v59_v15 = vcvt.s32.f32 %v57_v14  ;;  %v58_v22 = vcvt.s32.f32 %v56_v20 }
  0x8b   :  { %60 = vmin.xlane.f32.xlu1 %v59_v15 }
  0xf6   :  { %v46_v17 = vpop.xlane.xlu1 %45 }
  0xf7   :  { %vm47_vm3 = vcmp.eq.f32.partialorder %v44_v10, %v46_v17  ;;  %v52_v24 = vcvt.f32.s32 %v46_v17 }
  0xf8   :  { %v48_v19 = vsel %vm47_vm3, %v43_v18, inf }
  0xf9   :  { %49 = vmin.xlane.f32.xlu2 %v48_v19  ;;  %v53_v26 = vshll.u32 %v52_v24, 16 }
  0xfe   :  { %v61_v21 = vpop.xlane.xlu1 %60 }
  0xff   :  { %vm62_vm4 = vcmp.eq.f32.partialorder %v59_v15, %v61_v21  ;;  %v67_v29 = vcvt.f32.s32 %v61_v21 }
 0x100   :  { %v63_v23 = vsel %vm62_vm4, %v58_v22, inf }
 0x101   :  { %64 = vmin.xlane.f32.xlu2 %v63_v23  ;;  %v68_v32 = vshll.u32 %v67_v29, 16 }
 0x16c   :  { %v50_v25 = vpop.xlane.xlu2 %49 }
 0x16d   :  { %v51_v27 = vcvt.f32.s32 %v50_v25 }
 0x16f   :  { %v54_v28 = vadd.s32 %v53_v26, %v51_v27 }
 0x171   :  { %v70_v30 = vcvt.s32.f32 %v54_v28 }
 0x173   :  { %72 = vxpose.xlu0.b32.start [1/2] (short) (narrow) %v70_v30, 8 }
 0x174   :  { %v65_v31 = vpop.xlane.xlu2 %64 }
 0x175   :  { %v66_v33 = vcvt.f32.s32 %v65_v31 }
 0x177   :  { %v69_v34 = vadd.s32 %v68_v32, %v66_v33 }
 0x179   :  { %v71_v35 = vcvt.s32.f32 %v69_v34 }
 0x17b   :  { %73 = vxpose.xlu0.b32.end [2/2] (short) (narrow) %v71_v35, 8 }
 0x217   :  { %v88_v36 = vpop.trf.xlu0 }
 0x218   :  { %105 = vst.msk [vmem:[#allocation5] sm:$0x1] %vm104_vm5, %v88_v36 }
 0x219   :  { %116 = dma.vmem_to_hbm [thread:$0]  %s112_s13, 16, %s114_s16, [#allocation4]  }
 0x21a   :  { %178 = dma.done.wait [#allocation4], 16  }
 0x21b   :  { %179 = vsyncadd [#allocation4], 4294967280 }
 0x21c   :  { %121 = vsyncpa [#allocation3], 1 }
 0x21d   :  { %122 = vsyncpa [#allocation4], 1 }

</bundles_post_ra>
